<compile_context>
chip_gen: v5e
topology: v5e:2x2
jax: 0.10.0
libtpu: 0.0.40
codegen_flags: <defaults>
</compile_context>

<pallas_src>
import functools
import math

import jax
import jax.numpy as jnp
from jax.experimental import pallas as pl
from jax.experimental.pallas import tpu as pltpu

# ----------------------------------------------------------------------------- config
N_FEATURES = 8
IN_CHANNELS = 3
CHANNEL_SCALE_FACTORS = (1, 2, 4, 8)
CONVNEXT_SF = 2
HEADS, HEAD_DIM = 4, 32
HIDDEN = HEADS * HEAD_DIM                      # 128
TIME_DIM = N_FEATURES * 4                      # 32
INIT_CHANNELS = N_FEATURES // 3 * 2            # 4


def _round_up(x, m):
    return ((x + m - 1) // m) * m


def _gelu(x):
    # TODO(synk): exact-erf GELU stays as XLA elementwise glue (erf lowering inside Mosaic is not
    # relied upon); bias / residual epilogues are fused into the Pallas matmul instead.
    return jax.nn.gelu(x, approximate=False)


# ============================================================================ matmul (+ fused epilogue)
def _mm_kernel(has_bias, has_res, *refs):
    a_ref, b_ref = refs[0], refs[1]
    o_ref = refs[-1]
    acc = jnp.dot(a_ref[...], b_ref[...], preferred_element_type=jnp.float32)
    idx = 2
    if has_bias:
        acc = acc + refs[idx][...]
        idx += 1
    if has_res:
        acc = acc + refs[idx][...]
    o_ref[...] = acc


def pallas_matmul(a, b, bias=None, residual=None):
    """(M, K) @ (K, N) -> (M, N) fp32.  bf16 MXU inputs, fp32 accumulate.
    K and N are full-size blocks (no 128-padding); only M is tiled (256-row blocks when big)."""
    M, K = a.shape
    K2, N = b.shape
    assert K == K2
    a = a.astype(jnp.bfloat16)
    b = b.astype(jnp.bfloat16)
    if M > 256 and M % 256 == 0:
        TM = 256                               # >=2 parallel M blocks for the big layers
    else:
        TM = _round_up(M, 8)                   # single full-M block otherwise
    Mp = _round_up(M, TM)
    if Mp != M:
        a = jnp.pad(a, ((0, Mp - M), (0, 0)))
        if residual is not None:
            residual = jnp.pad(residual, ((0, Mp - M), (0, 0)))
    in_specs = [pl.BlockSpec((TM, K), lambda i: (i, 0)),
                pl.BlockSpec((K, N), lambda i: (0, 0))]
    operands = [a, b]
    if bias is not None:
        in_specs.append(pl.BlockSpec((1, N), lambda i: (0, 0)))
        operands.append(bias.reshape(1, N).astype(jnp.float32))
    if residual is not None:
        in_specs.append(pl.BlockSpec((TM, N), lambda i: (i, 0)))
        operands.append(residual.astype(jnp.float32))
    out = pl.pallas_call(
        functools.partial(_mm_kernel, bias is not None, residual is not None),
        out_shape=jax.ShapeDtypeStruct((Mp, N), jnp.float32),
        grid=(Mp // TM,),
        in_specs=in_specs,
        out_specs=pl.BlockSpec((TM, N), lambda i: (i, 0)),
        compiler_params=pltpu.CompilerParams(dimension_semantics=("parallel",)),
    )(*operands)
    return out[:M] if Mp != M else out


# ============================================================================ batched matmul
def _bmm_kernel(dn, a_ref, b_ref, o_ref):
    o_ref[...] = jax.lax.dot_general(a_ref[...], b_ref[...], dimension_numbers=dn,
                                     preferred_element_type=jnp.float32)


def pallas_bmm(a, b, trans_b=False):
    """Batched matmul, bf16 MXU inputs / fp32 out, whole (tiny) batch in one grid step.
    trans_b=True contracts the last dim of both operands (like einsum 'bmk,bnk->bmn')."""
    Ba, M, Ka = a.shape
    if trans_b:
        _, N, Kb = b.shape
        dn = (((2,), (2,)), ((0,), (0,)))
    else:
        _, Kb, N = b.shape
        dn = (((2,), (1,)), ((0,), (0,)))
    assert Ka == Kb
    return pl.pallas_call(
        functools.partial(_bmm_kernel, dn),
        out_shape=jax.ShapeDtypeStruct((Ba, M, N), jnp.float32),
        grid=(1,),
        in_specs=[pl.BlockSpec(a.shape, lambda i: (0, 0, 0)),
                  pl.BlockSpec(b.shape, lambda i: (0, 0, 0))],
        out_specs=pl.BlockSpec((Ba, M, N), lambda i: (0, 0, 0)),
    )(a.astype(jnp.bfloat16), b.astype(jnp.bfloat16))


# ============================================================================ softmax (over lane or sublane axis)
def _softmax_kernel(axis, scale, x_ref, o_ref):
    x = x_ref[...]
    m = jnp.max(x, axis=axis, keepdims=True)
    e = jnp.exp(x - m)
    o_ref[...] = (e / jnp.sum(e, axis=axis, keepdims=True)) * scale


def pallas_softmax3d(x, axis, scale=1.0):
    """Softmax over `axis` (1 or 2) of a (G, D, N) array.  The whole tensor (tiny here) is one
    VMEM block, so softmax-over-d needs no HBM transpose and there is no row padding."""
    G, D, N = x.shape
    return pl.pallas_call(
        functools.partial(_softmax_kernel, axis, scale),
        out_shape=jax.ShapeDtypeStruct((G, D, N), jnp.float32),
        grid=(1,),
        in_specs=[pl.BlockSpec((G, D, N), lambda i: (0, 0, 0))],
        out_specs=pl.BlockSpec((G, D, N), lambda i: (0, 0, 0)),
    )(x.astype(jnp.float32))


# ============================================================================ GroupNorm(num_groups=1)
def _gn_kernel(x_ref, g_ref, b_ref, o_ref):
    x = x_ref[...]                               # (1, HW, C)
    mean = jnp.mean(x)
    var = jnp.mean((x - mean) ** 2)
    inv = jax.lax.rsqrt(var + 1e-5)
    o_ref[...] = (x - mean) * inv * g_ref[...] + b_ref[...]


def groupnorm1(x, gamma, beta):
    """GroupNorm(num_groups=1) on NHWC: normalize over (H, W, C) per sample, affine per channel."""
    B, H, W, C = x.shape
    xr = x.reshape(B, H * W, C)
    out = pl.pallas_call(
        _gn_kernel,
        out_shape=jax.ShapeDtypeStruct((B, H * W, C), jnp.float32),
        grid=(B,),
        in_specs=[pl.BlockSpec((1, H * W, C), lambda i: (i, 0, 0)),
                  pl.BlockSpec((1, 1, C), lambda i: (0, 0, 0)),
                  pl.BlockSpec((1, 1, C), lambda i: (0, 0, 0))],
        out_specs=pl.BlockSpec((1, H * W, C), lambda i: (i, 0, 0)),
        compiler_params=pltpu.CompilerParams(dimension_semantics=("parallel",)),
    )(xr, gamma.reshape(1, 1, C), beta.reshape(1, 1, C))
    return out.reshape(B, H, W, C)


# ============================================================================ fused depthwise 7x7 + time-cond + GroupNorm(1)
def _dw_gn_kernel(x_ref, w_ref, b_ref, c_ref, g_ref, be_ref, o_ref):
    _, H, W, C = o_ref.shape
    x = x_ref[0]                                 # (H+6, W+6, C)
    w = w_ref[...]                               # (49, 1, 1, C)
    acc = jnp.zeros((H, W, C), jnp.float32)
    for tap in range(49):                        # VPU shift-and-accumulate, no im2col, no MXU
        i, j = divmod(tap, 7)
        acc = acc + x[i:i + H, j:j + W, :] * w[tap]
    acc = acc + b_ref[...] + c_ref[0]            # conv bias + time conditioning
    mean = jnp.mean(acc)                         # GroupNorm(num_groups=1)
    var = jnp.mean((acc - mean) ** 2)
    inv = jax.lax.rsqrt(var + 1e-5)
    o_ref[0] = (acc - mean) * inv * g_ref[...] + be_ref[...]


def dwconv7_cond_gn(x, w, b, cond, gamma, beta):
    """Fused: depthwise 7x7 conv (groups=C, pad=3) + bias + per-sample cond add + GroupNorm(1)."""
    B, H, W, C = x.shape
    xp = jnp.pad(x, ((0, 0), (3, 3), (3, 3), (0, 0)))
    wt = jnp.transpose(w[:, 0], (1, 2, 0)).reshape(49, 1, 1, C)     # tap-major (kh, kw)
    return pl.pallas_call(
        _dw_gn_kernel,
        out_shape=jax.ShapeDtypeStruct((B, H, W, C), jnp.float32),
        grid=(B,),
        in_specs=[pl.BlockSpec((1, H + 6, W + 6, C), lambda i: (i, 0, 0, 0)),
                  pl.BlockSpec((49, 1, 1, C), lambda i: (0, 0, 0, 0)),
                  pl.BlockSpec((1, 1, C), lambda i: (0, 0, 0)),
                  pl.BlockSpec((1, 1, 1, C), lambda i: (i, 0, 0, 0)),
                  pl.BlockSpec((1, 1, C), lambda i: (0, 0, 0)),
                  pl.BlockSpec((1, 1, C), lambda i: (0, 0, 0))],
        out_specs=pl.BlockSpec((1, H, W, C), lambda i: (i, 0, 0, 0)),
        compiler_params=pltpu.CompilerParams(dimension_semantics=("parallel",)),
    )(xp, wt, b.reshape(1, 1, C), cond.reshape(B, 1, 1, C),
      gamma.reshape(1, 1, C), beta.reshape(1, 1, C))


# ============================================================================ conv / linear glue
def _im2col(x, kh, kw, stride, padding):
    B, H, W, C = x.shape
    xp = jnp.pad(x, ((0, 0), (padding, padding), (padding, padding), (0, 0)))
    Ho = (H + 2 * padding - kh) // stride + 1
    Wo = (W + 2 * padding - kw) // stride + 1
    cols = []
    for i in range(kh):
        for j in range(kw):
            cols.append(xp[:, i:i + stride * Ho:stride, j:j + stride * Wo:stride, :])
    patches = jnp.concatenate(cols, axis=-1)      # (B, Ho, Wo, kh*kw*C) ordered (kh, kw, c)
    return patches, Ho, Wo


def conv2d(x, w, b=None, stride=1, padding=0, residual=None):
    """x: NHWC, w: (Cout, Cin, KH, KW) PyTorch layout.  bias / residual fused into the matmul."""
    # TODO(synk): im2col is kept as XLA strided slices (bf16) rather than fused as an extra
    # reduction grid axis of the Pallas matmul.
    Cout, Cin, KH, KW = w.shape
    B = x.shape[0]
    patches, Ho, Wo = _im2col(x.astype(jnp.bfloat16), KH, KW, stride, padding)
    A = patches.reshape(B * Ho * Wo, KH * KW * Cin)
    Wm = jnp.transpose(w, (2, 3, 1, 0)).reshape(KH * KW * Cin, Cout).astype(jnp.bfloat16)
    res_flat = residual.reshape(B * Ho * Wo, Cout) if residual is not None else None
    y = pallas_matmul(A, Wm, bias=b, residual=res_flat)
    return y.reshape(B, Ho, Wo, Cout)


def conv_transpose2d(x, w, b, stride=2, padding=1):
    """ConvTranspose2d k=4,s=2,p=1. w: (Cin, Cout, KH, KW) PyTorch layout."""
    B, H, W, Cin = x.shape
    _, Cout, KH, KW = w.shape
    xd = jnp.zeros((B, (H - 1) * stride + 1, (W - 1) * stride + 1, Cin), x.dtype)
    xd = xd.at[:, ::stride, ::stride, :].set(x)
    pad = KH - 1 - padding
    w_conv = jnp.transpose(w[:, :, ::-1, ::-1], (1, 0, 2, 3))                # (Cout, Cin, KH, KW)
    return conv2d(xd, w_conv, b, stride=1, padding=pad)


def linear(x, p):
    # Tiny time-MLP matmuls stay in plain XLA (a Pallas launch would be pure overhead here).
    return jnp.dot(x, p['w'].T) + p['b']


# ============================================================================ modules
def sinusoidal_emb(time, dim):
    half = dim // 2
    partial = math.log(10000) / (half - 1)
    emb = jnp.exp(jnp.arange(half, dtype=jnp.float32) * -partial)
    emb = time[:, None] * emb[None, :]
    return jnp.concatenate([jnp.sin(emb), jnp.cos(emb)], axis=-1)


def convnext_block(p, x, t):
    B, H, W, Cin = x.shape
    if ('time_proj' in p) and (t is not None):
        cond = linear(_gelu(t), p['time_proj'])                              # (B, Cin)
    else:
        cond = jnp.zeros((B, Cin), jnp.float32)
    h = dwconv7_cond_gn(x, p['ds_conv']['w'], p['ds_conv']['b'], cond,
                        p['gn1']['g'], p['gn1']['b'])
    h = conv2d(h, p['conv1']['w'], p['conv1']['b'], padding=1)
    h = _gelu(h)
    h = groupnorm1(h, p['gn2']['g'], p['gn2']['b'])
    res = conv2d(x, p['res']['w'], p['res']['b']) if 'res' in p else x
    h = conv2d(h, p['conv2']['w'], p['conv2']['b'], padding=1, residual=res)  # fused residual add
    return h


def _to_bhdn(t, B, n):
    return jnp.transpose(t.reshape(B, n, HEADS, HEAD_DIM), (0, 2, 3, 1))     # (B, h, d, n)


def linear_attention(p, x):
    B, H, W, C = x.shape
    n = H * W
    qkv = conv2d(x, p['to_qkv']['w'])                                        # no bias
    q, k, v = jnp.split(qkv, 3, axis=-1)
    q, k, v = (_to_bhdn(t, B, n).reshape(B * HEADS, HEAD_DIM, n) for t in (q, k, v))
    q = pallas_softmax3d(q, axis=1, scale=HEAD_DIM ** -0.5)                  # softmax over d, * scale
    k = pallas_softmax3d(k, axis=2)                                          # softmax over n
    context = pallas_bmm(k, v, trans_b=True)                                 # (B*h, d, e)
    out = pallas_bmm(jnp.swapaxes(context, 1, 2), q)                         # (B*h, e, n)
    out = out.reshape(B, HEADS, HEAD_DIM, n)
    out = jnp.transpose(out, (0, 3, 1, 2)).reshape(B, H, W, HIDDEN)
    out = conv2d(out, p['to_out_conv']['w'], p['to_out_conv']['b'])
    return groupnorm1(out, p['to_out_gn']['g'], p['to_out_gn']['b'])


def attention(p, x):
    B, H, W, C = x.shape
    n = H * W
    qkv = conv2d(x, p['to_qkv']['w'])
    q, k, v = jnp.split(qkv, 3, axis=-1)
    q, k, v = (_to_bhdn(t, B, n).reshape(B * HEADS, HEAD_DIM, n) for t in (q, k, v))
    q = q * (HEAD_DIM ** -0.5)
    sim = pallas_bmm(jnp.swapaxes(q, 1, 2), k)                               # (B*h, i, j)
    # NOTE: reference subtracts amax before softmax; the softmax kernel already does a stable
    # max-subtraction so the (shift-invariant) extra subtraction is skipped.
    attn = pallas_softmax3d(sim, axis=2)
    out = pallas_bmm(attn, v, trans_b=True)                                  # (B*h, i, d)
    out = out.reshape(B, HEADS, n, HEAD_DIM)
    out = jnp.transpose(out, (0, 2, 1, 3)).reshape(B, H, W, HIDDEN)
    return conv2d(out, p['to_out']['w'], p['to_out']['b'])


def linattn_residual(p, x):
    return linear_attention(p['la'], groupnorm1(x, p['gn']['g'], p['gn']['b'])) + x


def attn_residual(p, x):
    return attention(p['at'], groupnorm1(x, p['gn']['g'], p['gn']['b'])) + x


def unet_forward(params, x_nchw, time):
    x = jnp.transpose(x_nchw, (0, 2, 3, 1))                                  # -> NHWC
    x = conv2d(x, params['init_conv']['w'], params['init_conv']['b'], padding=3)
    t = sinusoidal_emb(time, N_FEATURES)
    t = linear(t, params['time_lin1'])
    t = _gelu(t)
    t = linear(t, params['time_lin2'])

    stack = []
    for stage in params['encoder']:
        x = convnext_block(stage['block1'], x, t)
        x = convnext_block(stage['block2'], x, t)
        x = linattn_residual(stage['attn'], x)
        stack.append(x)
        if 'down' in stage:
            x = conv2d(x, stage['down']['w'], stage['down']['b'], stride=2, padding=1)

    x = convnext_block(params['mid_block1'], x, t)
    x = attn_residual(params['mid_attn'], x)
    x = convnext_block(params['mid_block2'], x, t)

    for stage in params['decoder']:
        skip = stack.pop()
        x = jnp.concatenate([x, skip], axis=-1)
        x = convnext_block(stage['block1'], x, t)
        x = convnext_block(stage['block2'], x, t)
        x = linattn_residual(stage['attn'], x)
        x = conv_transpose2d(x, stage['up']['w'], stage['up']['b'])

    x = convnext_block(params['final_block'], x, None)
    x = conv2d(x, params['final_conv']['w'], params['final_conv']['b'])
    return jnp.transpose(x, (0, 3, 1, 2))                                    # -> NCHW


# ============================================================================ deterministic parameter init
class KeyGen:
    def __init__(self, seed):
        self._key = jax.random.PRNGKey(seed)

    def __call__(self):
        self._key, sub = jax.random.split(self._key)
        return sub


def _w(kg, shape, fan_in):
    return jax.random.normal(kg(), shape, jnp.float32) / math.sqrt(fan_in)


def conv_p(kg, cout, cin, kh, kw, bias=True):
    p = {'w': _w(kg, (cout, cin, kh, kw), cin * kh * kw)}
    if bias:
        p['b'] = 0.01 * jax.random.normal(kg(), (cout,), jnp.float32)
    return p


def dwconv_p(kg, c, k):
    return {'w': _w(kg, (c, 1, k, k), k * k),
            'b': 0.01 * jax.random.normal(kg(), (c,), jnp.float32)}


def convT_p(kg, cin, cout, k):
    return {'w': _w(kg, (cin, cout, k, k), cin * k * k),
            'b': 0.01 * jax.random.normal(kg(), (cout,), jnp.float32)}


def lin_p(kg, out_f, in_f):
    return {'w': _w(kg, (out_f, in_f), in_f),
            'b': 0.01 * jax.random.normal(kg(), (out_f,), jnp.float32)}


def gn_p(c):
    return {'g': jnp.ones((c,), jnp.float32), 'b': jnp.zeros((c,), jnp.float32)}


def convnext_p(kg, cin, cout, time_dim, sf=CONVNEXT_SF):
    p = {'ds_conv': dwconv_p(kg, cin, 7),
         'gn1': gn_p(cin),
         'conv1': conv_p(kg, cout * sf, cin, 3, 3),
         'gn2': gn_p(cout * sf),
         'conv2': conv_p(kg, cout, cout * sf, 3, 3)}
    if time_dim is not None:
        p['time_proj'] = lin_p(kg, cin, time_dim)
    if cin != cout:
        p['res'] = conv_p(kg, cout, cin, 1, 1)
    return p


def linattn_p(kg, c):
    return {'to_qkv': conv_p(kg, HIDDEN * 3, c, 1, 1, bias=False),
            'to_out_conv': conv_p(kg, c, HIDDEN, 1, 1),
            'to_out_gn': gn_p(c)}


def attn_p(kg, c):
    return {'to_qkv': conv_p(kg, HIDDEN * 3, c, 1, 1, bias=False),
            'to_out': conv_p(kg, c, HIDDEN, 1, 1)}


def make_unet_params(kg):
    dims = [INIT_CHANNELS] + [N_FEATURES * m for m in CHANNEL_SCALE_FACTORS]
    res_trans = list(zip(dims[:-1], dims[1:]))
    n_res = len(res_trans)
    p = {'init_conv': conv_p(kg, INIT_CHANNELS, IN_CHANNELS, 7, 7),
         'time_lin1': lin_p(kg, TIME_DIM, N_FEATURES),
         'time_lin2': lin_p(kg, TIME_DIM, TIME_DIM)}
    enc = []
    for idx, (cin, cout) in enumerate(res_trans):
        stage = {'block1': convnext_p(kg, cin, cout, TIME_DIM),
                 'block2': convnext_p(kg, cout, cout, TIME_DIM),
                 'attn': {'gn': gn_p(cout), 'la': linattn_p(kg, cout)}}
        if idx < n_res - 1:
            stage['down'] = conv_p(kg, cout, cout, 4, 4)
        enc.append(stage)
    p['encoder'] = enc
    mid_c = dims[-1]
    p['mid_block1'] = convnext_p(kg, mid_c, mid_c, TIME_DIM)
    p['mid_attn'] = {'gn': gn_p(mid_c), 'at': attn_p(kg, mid_c)}
    p['mid_block2'] = convnext_p(kg, mid_c, mid_c, TIME_DIM)
    dec = []
    for (cin, cout) in reversed(res_trans[1:]):
        dec.append({'block1': convnext_p(kg, cout * 2, cin, TIME_DIM),
                    'block2': convnext_p(kg, cin, cin, TIME_DIM),
                    'attn': {'gn': gn_p(cin), 'la': linattn_p(kg, cin)},
                    'up': convT_p(kg, cin, cin, 4)})
    p['decoder'] = dec
    p['final_block'] = convnext_p(kg, N_FEATURES, N_FEATURES, None)
    p['final_conv'] = conv_p(kg, IN_CHANNELS, N_FEATURES, 1, 1)
    return p


# ============================================================================ main
if __name__ == "__main__":
    key = jax.random.PRNGKey(0)
    kx, kt = jax.random.split(key)
    x = jax.random.normal(kx, (2, IN_CHANNELS, 16, 16), jnp.float32)
    time = jnp.array([0.5, 3.0], jnp.float32)

    params = make_unet_params(KeyGen(42))
    out = unet_forward(params, x, time)
    out = jax.block_until_ready(out)

    assert out.shape == (2, IN_CHANNELS, 16, 16), out.shape
    assert bool(jnp.all(jnp.isfinite(out)))
    print("KERNEL_OK")
</pallas_src>

<mosaic_0001>
module attributes {stable_mosaic.version = 11 : i64} {
  func.func @_mm_kernel(%arg0: i32, %arg1: memref<256x147xbf16, #tpu.memory_space<vmem>>, %arg2: memref<147x4xbf16, #tpu.memory_space<vmem>>, %arg3: memref<1x4xf32, #tpu.memory_space<vmem>>, %arg4: memref<256x4xf32, #tpu.memory_space<vmem>>) attributes {dimension_semantics = [#tpu.dimension_semantics<parallel>], iteration_bounds = array<i64: 2>, scalar_prefetch = 0 : i64, scratch_operands = 0 : i64, tpu.core_type = #tpu.core_type<tc>, window_params = [{transform_indices = @transform_0, window_bounds = array<i64: 256, 147>}, {pipeline_mode = #tpu.pipeline_mode<synchronous>, transform_indices = @transform_1, window_bounds = array<i64: 147, 4>}, {pipeline_mode = #tpu.pipeline_mode<synchronous>, transform_indices = @transform_2, window_bounds = array<i64: 1, 4>}, {transform_indices = @transform_3, window_bounds = array<i64: 256, 4>}]} {
    %c0 = arith.constant 0 : index
    %c0_0 = arith.constant 0 : index
    %0 = vector.load %arg1[%c0, %c0_0] : memref<256x147xbf16, #tpu.memory_space<vmem>>, vector<256x147xbf16>
    %c0_1 = arith.constant 0 : index
    %c0_2 = arith.constant 0 : index
    %1 = vector.load %arg2[%c0_1, %c0_2] : memref<147x4xbf16, #tpu.memory_space<vmem>>, vector<147x4xbf16>
    %cst = arith.constant dense<0.000000e+00> : vector<256x4xf32>
    %2 = tpu.matmul %0, %1, %cst {dimension_numbers = #tpu.dot_dimension_numbers<[1], [0], [0], [1], [0, 0, 1, 1], [], []>} : vector<256x147xbf16>, vector<147x4xbf16>, vector<256x4xf32> -> vector<256x4xf32>
    %c0_3 = arith.constant 0 : index
    %c0_4 = arith.constant 0 : index
    %3 = vector.load %arg3[%c0_3, %c0_4] : memref<1x4xf32, #tpu.memory_space<vmem>>, vector<1x4xf32>
    %4 = vector.broadcast %3 : vector<1x4xf32> to vector<256x4xf32>
    %5 = arith.addf %2, %4 : vector<256x4xf32>
    %c0_5 = arith.constant 0 : index
    %c0_6 = arith.constant 0 : index
    %6 = vector.load %arg4[%c0_5, %c0_6] : memref<256x4xf32, #tpu.memory_space<vmem>>, vector<256x4xf32>
    tpu.vector_store %arg4[%c0_5, %c0_6], %5 {strides = array<i32>} : memref<256x4xf32, #tpu.memory_space<vmem>>, vector<256x4xf32>,
    return
  }
  func.func @transform_0(%arg0: i32) -> (i32, i32) {
    %c0_i32 = arith.constant 0 : i32
    %c0_i32_0 = arith.constant 0 : i32
    return %arg0, %c0_i32 : i32, i32
  }
  func.func @transform_1(%arg0: i32) -> (i32, i32) {
    %c0_i32 = arith.constant 0 : i32
    %c0_i32_0 = arith.constant 0 : i32
    %c0_i32_1 = arith.constant 0 : i32
    return %c0_i32, %c0_i32_0 : i32, i32
  }
  func.func @transform_2(%arg0: i32) -> (i32, i32) {
    %c0_i32 = arith.constant 0 : i32
    %c0_i32_0 = arith.constant 0 : i32
    %c0_i32_1 = arith.constant 0 : i32
    return %c0_i32, %c0_i32_0 : i32, i32
  }
  func.func @transform_3(%arg0: i32) -> (i32, i32) {
    %c0_i32 = arith.constant 0 : i32
    %c0_i32_0 = arith.constant 0 : i32
    return %arg0, %c0_i32 : i32, i32
  }
}

</mosaic_0001>

<bundles_post_ra>
// kernel: tpu_custom_call.1
= control target key start
LH: loop header
LB: loop body
LE: loop exit
PB: predicated region body
PF: predicated region fallthrough
CT: control target
= control target key end

     0   :  { %s1040_s12 = smov 0   ;;  %s1285_s0 = inlined_call_operand.vmem [shape: bf16[512,147], index: 0, kind: input, shape index: {}]   ;;  %s1286_s1 = inlined_call_operand.vmem [shape: bf16[147,4], index: 1, kind: input, shape index: {}]   ;;  %s1287_s2 = inlined_call_operand.vmem [shape: f32[1,4], index: 2, kind: input, shape index: {}]   ;;  %s1288_s3 = inlined_call_operand.vmem [shape: f32[512,4], index: 3, kind: output, shape index: {}]  }
   0x1 LB: > { %s757_s13 = sadd.s32 4294967295, %s1017_s12   ;;  %p761_p0 = scmp.ge.s32.totalorder %s1017_s12, 1  ;;  %s1017_s12 = sphi %s1040_s12, %s13_s12  }
   0x2   : > { %p139_p1 = scmp.lt.s32.totalorder %s1017_s12, 3 }
   0x4   : > { %p140_p2 = pnand %p761_p0, %p139_p1 }
   0x5   : > { %s762_s18 = sshll.u32 (!%p140_p2), %s757_s13, 5 }
   0x6   : > { %143 = sbr.rel (%p140_p2) target bundleno = 300 (0x12c), region = 32  ;;  %p165_p3 = scmp.lt.s32.totalorder (!%p140_p2), %s762_s18, 63 }
   0xb   : > { %v989_v0 = vld [vmem:[%s1286_s1 + $0x38] sm:$0xff]  ;;  %v228_v1 = vld [vmem:[%s1286_s1 + $0x48] sm:$0x3]  ;;  %vm483_vm0 = vcmask 1040384   ;;  %vm484_vm1 = vcmask 1041408   ;;  %v988_v3 = vld [vmem:[%s1286_s1 + $0x30] sm:$0xff] }
   0xc   : > { %v414_v2 = vunpack.c.l.b16 %v228_v1  ;;  %490 = vmatpush.bf16.msra.mxu0 %v989_v0  ;;  %991 = vmatpush.bf16.msra.mxu2 %v989_v0  ;;  %v1019_v4 = vmov 65535   ;;  %s1290_s18 = smov (!%p165_p3, %s762_s18), 63  ;;  %v987_v9 = vld [vmem:[%s1286_s1 + $0x28] sm:$0xff]  ;;  %v990_v10 = vld [vmem:[%s1286_s1 + $0x40] sm:$0xff]  ;;  %vm434_vm2 = vcmask 154624   ;;  %v985_v18 = vld [vmem:[%s1286_s1 + $0x18] sm:$0xff] }
   0xd   : > { %v485_v5 = vsel %vm483_vm0, 4294967295, %v1019_v4  ;;  %s949_s23 = sshll.u32 %s1290_s18, 3  ;;  %v986_v14 = vld [vmem:[%s1286_s1 + $0x20] sm:$0xff]  ;;  %v984_v19 = vld [vmem:[%s1286_s1 + $0x10] sm:$0xff]  ;;  %v983_v20 = vld [vmem:[%s1286_s1 + $0x8] sm:$0xff]  ;;  %vm668_vm3 = vcmask 31744  }
   0xe   : > { %v424_v6 = vpack.c.b16 %v414_v2, %v414_v2  ;;  %v486_v7 = vsel %vm484_vm1, %v485_v5, 0  ;;  %s1071_s28 = scalar_lea.vmem %s1285_s0, %s949_s23  ;;  %v982_v26 = vld [vmem:[%s1286_s1] sm:$0xff]  ;;  %s1179_s17 = scalar_lea.vmem %s1288_s3, %s949_s23 }
   0xf   : > { %v950_v11 = vld [vmem:[%s1071_s28 + $0x4] sm:$0xf]  ;;  %v771_v12 = vld [vmem:[%s1071_s28 + $0x8] sm:$0xf0]  ;;  %v968_v15 = vld [vmem:[%s1071_s28 + $0x94] sm:$0xf] }
  0x10   : > { %v488_v8 = vand.u32 %v486_v7, %v424_v6  ;;  %491 = vmatpush.bf16.msra.mxu0 %v988_v3  ;;  %992 = vmatpush.bf16.msra.mxu2 %v988_v3  ;;  %v774_v13 = vor.u32 %v950_v11, %v771_v12  ;;  %v843_v16 = vld [vmem:[%s1071_s28 + $0x98] sm:$0xf0]  ;;  %v952_v21 = vld [vmem:[%s1071_s28 + $0x14] sm:$0xf]  ;;  %v970_v23 = vld [vmem:[%s1071_s28 + $0xa4] sm:$0xf] }
  0x11   : > { %v846_v17 = vor.u32 %v968_v15, %v843_v16  ;;  %v779_v22 = vld [vmem:[%s1071_s28 + $0x18] sm:$0xf0]  ;;  %v851_v24 = vld [vmem:[%s1071_s28 + $0xa8] sm:$0xf0]  ;;  %v769_v27 = vld [vmem:[%s1071_s28] sm:$0xf] }
  0x12   : > { %585 = vmatpush.bf16.msra.mxu1 %v488_v8  ;;  %999 = vmatpush.bf16.msra.mxu3 %v488_v8  ;;  %v782_v25 = vor.u32 %v952_v21, %v779_v22  ;;  %v951_v28 = vld [vmem:[%s1071_s28 + $0x4] sm:$0xf0]  ;;  %v833_v29 = vld [vmem:[%s1071_s28 + $0x80] sm:$0xf]  ;;  %v854_v31 = vor.u32 %v970_v23, %v851_v24  ;;  %v954_v34 = vld [vmem:[%s1071_s28 + $0x24] sm:$0xf] }
  0x13   : > { %v967_v30 = vld [vmem:[%s1071_s28 + $0x84] sm:$0xf0]  ;;  %v770_v32 = vor.u32 %v951_v28, %v769_v27  ;;  %v787_v35 = vld [vmem:[%s1071_s28 + $0x28] sm:$0xf0]  ;;  %v972_v36 = vld [vmem:[%s1071_s28 + $0xb4] sm:$0xf] }
  0x14   : > { %492 = vmatpush.bf16.msra.mxu0 %v987_v9  ;;  %993 = vmatpush.bf16.msra.mxu2 %v987_v9  ;;  %v834_v33 = vor.u32 %v967_v30, %v833_v29  ;;  %v859_v37 = vld [vmem:[%s1071_s28 + $0xb8] sm:$0xf0]  ;;  %v790_v38 = vor.u32 %v954_v34, %v787_v35  ;;  %v777_v39 = vld [vmem:[%s1071_s28 + $0x10] sm:$0xf]  ;;  %v953_v40 = vld [vmem:[%s1071_s28 + $0x14] sm:$0xf0] }
  0x15   : > { %v841_v41 = vld [vmem:[%s1071_s28 + $0x90] sm:$0xf]  ;;  %v969_v42 = vld [vmem:[%s1071_s28 + $0x94] sm:$0xf0]  ;;  %v862_v43 = vor.u32 %v972_v36, %v859_v37  ;;  %v778_v44 = vor.u32 %v953_v40, %v777_v39  ;;  %v956_v46 = vld [vmem:[%s1071_s28 + $0x34] sm:$0xf] }
  0x16   : > { %586 = vmatpush.bf16.msra.mxu1 %v990_v10  ;;  %1000 = vmatpush.bf16.msra.mxu3 %v990_v10  ;;  %v842_v45 = vor.u32 %v969_v42, %v841_v41  ;;  %v795_v47 = vld [vmem:[%s1071_s28 + $0x38] sm:$0xf0]  ;;  %v974_v48 = vld [vmem:[%s1071_s28 + $0xc4] sm:$0xf]  ;;  %v867_v49 = vld [vmem:[%s1071_s28 + $0xc8] sm:$0xf0] }
  0x17   : > { %v798_v50 = vor.u32 %v956_v46, %v795_v47  ;;  %v785_v51 = vld [vmem:[%s1071_s28 + $0x20] sm:$0xf]  ;;  %v955_v52 = vld [vmem:[%s1071_s28 + $0x24] sm:$0xf0]  ;;  %v870_v55 = vor.u32 %v974_v48, %v867_v49  ;;  %v958_v58 = vld [vmem:[%s1071_s28 + $0x44] sm:$0xf] }
  0x18   : > { %493 = vmatpush.bf16.msra.mxu0 %v986_v14  ;;  %994 = vmatpush.bf16.msra.mxu2 %v986_v14  ;;  %v849_v53 = vld [vmem:[%s1071_s28 + $0xa0] sm:$0xf]  ;;  %v971_v54 = vld [vmem:[%s1071_s28 + $0xa4] sm:$0xf0]  ;;  %v786_v56 = vor.u32 %v955_v52, %v785_v51  ;;  %v803_v59 = vld [vmem:[%s1071_s28 + $0x48] sm:$0xf0] }
  0x19   : > { %931 = vmatmul.msk.bf16.vlgmr.msra.gmra.mxu1 %vm434_vm2, %v774_v13  ;;  %940 = vmatmul.msk.bf16.vlgmr.msra.gmra.mxu3 %vm434_vm2, %v846_v17  ;;  %v850_v57 = vor.u32 %v971_v54, %v849_v53  ;;  %v976_v60 = vld [vmem:[%s1071_s28 + $0xd4] sm:$0xf]  ;;  %v875_v61 = vld [vmem:[%s1071_s28 + $0xd8] sm:$0xf0]  ;;  %v806_v62 = vor.u32 %v958_v58, %v803_v59  ;;  %v793_v63 = vld [vmem:[%s1071_s28 + $0x30] sm:$0xf] }
  0x1a   : > { %v957_v0 = vld [vmem:[%s1071_s28 + $0x34] sm:$0xf0]  ;;  %v857_v1 = vld [vmem:[%s1071_s28 + $0xb0] sm:$0xf]  ;;  %v878_v3 = vor.u32 %v976_v60, %v875_v61  ;;  %v960_v6 = vld [vmem:[%s1071_s28 + $0x54] sm:$0xf] }
  0x1b   : > { %v973_v2 = vld [vmem:[%s1071_s28 + $0xb4] sm:$0xf0]  ;;  %v794_v4 = vor.u32 %v957_v0, %v793_v63  ;;  %v811_v7 = vld [vmem:[%s1071_s28 + $0x58] sm:$0xf0]  ;;  %v978_v8 = vld [vmem:[%s1071_s28 + $0xe4] sm:$0xf] }
  0x1c   : > { %494 = vmatpush.bf16.msra.mxu0 %v985_v18  ;;  %995 = vmatpush.bf16.msra.mxu2 %v985_v18  ;;  %v858_v5 = vor.u32 %v973_v2, %v857_v1  ;;  %v883_v9 = vld [vmem:[%s1071_s28 + $0xe8] sm:$0xf0]  ;;  %v814_v10 = vor.u32 %v960_v6, %v811_v7  ;;  %v801_v11 = vld [vmem:[%s1071_s28 + $0x40] sm:$0xf]  ;;  %v959_v12 = vld [vmem:[%s1071_s28 + $0x44] sm:$0xf0] }
  0x1d   : > { %v865_v13 = vld [vmem:[%s1071_s28 + $0xc0] sm:$0xf]  ;;  %v975_v14 = vld [vmem:[%s1071_s28 + $0xc4] sm:$0xf0]  ;;  %v886_v15 = vor.u32 %v978_v8, %v883_v9  ;;  %v802_v16 = vor.u32 %v959_v12, %v801_v11  ;;  %v962_v18 = vld [vmem:[%s1071_s28 + $0x64] sm:$0xf] }
  0x1e   : > { %v866_v17 = vor.u32 %v975_v14, %v865_v13  ;;  %v891_v21 = vld [vmem:[%s1071_s28 + $0xf8] sm:$0xf0]  ;;  %v809_v23 = vld [vmem:[%s1071_s28 + $0x50] sm:$0xf]  ;;  %v961_v24 = vld [vmem:[%s1071_s28 + $0x54] sm:$0xf0] }
  0x1f   : > { %v810_v28 = vor.u32 %v961_v24, %v809_v23  ;;  %v964_v30 = vld [vmem:[%s1071_s28 + $0x74] sm:$0xf]  ;;  %v963_v34 = vld [vmem:[%s1071_s28 + $0x64] sm:$0xf0]  ;;  %v881_v35 = vld [vmem:[%s1071_s28 + $0xe0] sm:$0xf] }
  0x20   : > { %495 = vmatpush.bf16.msra.mxu0 %v984_v19  ;;  %996 = vmatpush.bf16.msra.mxu2 %v984_v19  ;;  %v819_v19 = vld [vmem:[%s1071_s28 + $0x68] sm:$0xf0]  ;;  %v979_v36 = vld [vmem:[%s1071_s28 + $0xe4] sm:$0xf0]  ;;  %v966_v39 = vld [vmem:[%s1071_s28 + $0x84] sm:$0xf] }
  0x21   : > { %v822_v22 = vor.u32 %v962_v18, %v819_v19  ;;  %v835_v40 = vld [vmem:[%s1071_s28 + $0x88] sm:$0xf0]  ;;  %v825_v42 = vld [vmem:[%s1071_s28 + $0x70] sm:$0xf]  ;;  %v981_v46 = vld [vmem:[%s1071_s28 + $0xf4] sm:$0xf0] }
  0x22   : > { %v838_v41 = vor.u32 %v966_v39, %v835_v40  ;;  %v1171_v51 = vld [vmem:[%s1287_s2] ss:$0 sm:$0xff] }
  0x24   : > { %496 = vmatpush.bf16.msra.mxu0 %v983_v20  ;;  %997 = vmatpush.bf16.msra.mxu2 %v983_v20  ;;  %v980_v20 = vld [vmem:[%s1071_s28 + $0xf4] sm:$0xf] }
  0x25   : > { %v894_v27 = vor.u32 %v980_v20, %v891_v21 }
  0x28   : > { %497 = vmatpush.bf16.msra.mxu0 %v982_v26  ;;  %998 = vmatpush.bf16.msra.mxu2 %v982_v26  ;;  %v977_v26 = vld [vmem:[%s1071_s28 + $0xd4] sm:$0xf0] }
  0x29   : > { %932 = vmatmul.msk.bf16.gmra.mxu1 %vm434_vm2, %v782_v25  ;;  %941 = vmatmul.msk.bf16.gmra.mxu3 %vm434_vm2, %v854_v31  ;;  %v873_v25 = vld [vmem:[%s1071_s28 + $0xd0] sm:$0xf]  ;;  %v827_v31 = vld [vmem:[%s1071_s28 + $0x78] sm:$0xf0] }
  0x2a   : > { %v874_v29 = vor.u32 %v977_v26, %v873_v25 }
  0x2b   : > { %498 = vmatmul.bf16.vlgmr.msra.gmra.mxu0 %v770_v32  ;;  %538 = vmatmul.bf16.vlgmr.msra.gmra.mxu2 %v834_v33  ;;  %v830_v32 = vor.u32 %v964_v30, %v827_v31  ;;  %v817_v33 = vld [vmem:[%s1071_s28 + $0x60] sm:$0xf] }
  0x2c   : > { %v818_v37 = vor.u32 %v963_v34, %v817_v33 }
  0x39   : > { %933 = vmatmul.msk.bf16.gmra.mxu1 %vm434_vm2, %v790_v38  ;;  %942 = vmatmul.msk.bf16.gmra.mxu3 %vm434_vm2, %v862_v43  ;;  %v882_v38 = vor.u32 %v979_v36, %v881_v35  ;;  %v965_v43 = vld [vmem:[%s1071_s28 + $0x74] sm:$0xf0] }
  0x3a   : > { %v826_v47 = vor.u32 %v965_v43, %v825_v42 }
  0x3b   : > { %503 = vmatmul.bf16.gmra.mxu0 %v778_v44  ;;  %543 = vmatmul.bf16.gmra.mxu2 %v842_v45  ;;  %v889_v45 = vld [vmem:[%s1071_s28 + $0xf0] sm:$0xf] }
  0x3c   : > { %v890_v48 = vor.u32 %v981_v46, %v889_v45 }
  0x49   : > { %934 = vmatmul.msk.bf16.gmra.mxu1 %vm434_vm2, %v798_v50  ;;  %943 = vmatmul.msk.bf16.gmra.mxu3 %vm434_vm2, %v870_v55 }
  0x4b   : > { %508 = vmatmul.bf16.gmra.mxu0 %v786_v56  ;;  %548 = vmatmul.bf16.gmra.mxu2 %v850_v57 }
  0x59   : > { %935 = vmatmul.msk.bf16.gmra.mxu1 %vm434_vm2, %v806_v62  ;;  %944 = vmatmul.msk.bf16.gmra.mxu3 %vm434_vm2, %v878_v3 }
  0x5b   : > { %513 = vmatmul.bf16.gmra.mxu0 %v794_v4  ;;  %553 = vmatmul.bf16.gmra.mxu2 %v858_v5 }
  0x69   : > { %936 = vmatmul.msk.bf16.gmra.mxu1 %vm434_vm2, %v814_v10  ;;  %945 = vmatmul.msk.bf16.gmra.mxu3 %vm434_vm2, %v886_v15 }
  0x6b   : > { %518 = vmatmul.bf16.gmra.mxu0 %v802_v16  ;;  %558 = vmatmul.bf16.gmra.mxu2 %v866_v17 }
  0x79   : > { %937 = vmatmul.msk.bf16.gmra.mxu1 %vm434_vm2, %v822_v22  ;;  %946 = vmatmul.msk.bf16.gmra.mxu3 %vm434_vm2, %v894_v27 }
  0x7b   : > { %523 = vmatmul.bf16.gmra.mxu0 %v810_v28  ;;  %563 = vmatmul.bf16.gmra.mxu2 %v874_v29 }
  0x89   : > { %938 = vmatmul.msk.bf16.gmra.mxu1 %vm434_vm2, %v830_v32 }
  0x8b   : > { %528 = vmatmul.bf16.gmra.mxu0 %v818_v37  ;;  %568 = vmatmul.bf16.gmra.mxu2 %v882_v38 }
  0x96   : > { %v588_v44 = vpop.f32.mrf.mxu1 }
  0x99   : > { %939 = vmatmul.msk.bf16.gmra.mxu1 %vm434_vm2, %v838_v41 }
  0x9b   : > { %533 = vmatmul.bf16.gmra.mxu0 %v826_v47  ;;  %573 = vmatmul.bf16.gmra.mxu2 %v890_v48 }
  0x9c   : > { %v633_v52 = vpop.f32.mrf.mxu3 }
  0x9e   : > { %v590_v49 = vpop.f32.mrf.mxu1 }
  0xa4   : > { %v635_v60 = vpop.f32.mrf.mxu3 }
  0xa6   : > { %v593_v50 = vpop.f32.mrf.mxu1 }
  0xa8   : > { %v499_v53 = vpop.f32.mrf.mxu0 }
  0xa9   : > { %v500_v54 = vadd.f32 %v1171_v51, %v499_v53 }
  0xab   : > { %v589_v55 = vadd.f32 %v588_v44, %v500_v54 }
  0xac   : > { %v638_v3 = vpop.f32.mrf.mxu3 }
  0xad   : > { %669 = vst.msk [vmem:[%s1179_s17] sm:$0xff] %vm668_vm3, %v589_v55 }
  0xae   : > { %v595_v56 = vpop.f32.mrf.mxu1  ;;  %v1183_v57 = vpop.f32.mrf.mxu2 }
  0xb0   : > { %v501_v58 = vpop.f32.mrf.mxu0 }
  0xb1   : > { %v502_v59 = vadd.f32 %v1171_v51, %v501_v58 }
  0xb3   : > { %v591_v61 = vadd.f32 %v590_v49, %v502_v59 }
  0xb4   : > { %v640_v12 = vpop.f32.mrf.mxu3 }
  0xb5   : > { %670 = vst.msk [vmem:[%s1179_s17 + $0x8] sm:$0xff] %vm668_vm3, %v591_v61 }
  0xb6   : > { %v598_v62 = vpop.f32.mrf.mxu1  ;;  %v1188_v63 = vpop.f32.mrf.mxu2 }
  0xb8   : > { %v504_v0 = vpop.f32.mrf.mxu0 }
  0xb9   : > { %v505_v1 = vadd.f32 %v1171_v51, %v504_v0 }
  0xbb   : > { %v594_v2 = vadd.f32 %v593_v50, %v505_v1 }
  0xbc   : > { %v643_v21 = vpop.f32.mrf.mxu3 }
  0xbd   : > { %671 = vst.msk [vmem:[%s1179_s17 + $0x10] sm:$0xff] %vm668_vm3, %v594_v2 }
  0xbe   : > { %v600_v4 = vpop.f32.mrf.mxu1  ;;  %v544_v5 = vpop.f32.mrf.mxu2 }
  0xbf   : > { %v545_v6 = vadd.f32 %v1171_v51, %v544_v5 }
  0xc0   : > { %v506_v7 = vpop.f32.mrf.mxu0 }
  0xc1   : > { %v507_v8 = vadd.f32 %v1171_v51, %v506_v7  ;;  %v634_v9 = vadd.f32 %v633_v52, %v545_v6 }
  0xc3   : > { %v596_v10 = vadd.f32 %v595_v56, %v507_v8  ;;  %687 = vst.msk [vmem:[%s1179_s17 + $0x90] sm:$0xff] %vm668_vm3, %v634_v9 }
  0xc4   : > { %v645_v32 = vpop.f32.mrf.mxu3 }
  0xc5   : > { %672 = vst.msk [vmem:[%s1179_s17 + $0x18] sm:$0xff] %vm668_vm3, %v596_v10 }
  0xc6   : > { %v603_v11 = vpop.f32.mrf.mxu1  ;;  %v546_v13 = vpop.f32.mrf.mxu2 }
  0xc7   : > { %v547_v14 = vadd.f32 %v1171_v51, %v546_v13 }
  0xc8   : > { %v509_v15 = vpop.f32.mrf.mxu0 }
  0xc9   : > { %v510_v16 = vadd.f32 %v1171_v51, %v509_v15  ;;  %v636_v17 = vadd.f32 %v635_v60, %v547_v14 }
  0xcb   : > { %v599_v18 = vadd.f32 %v598_v62, %v510_v16  ;;  %688 = vst.msk [vmem:[%s1179_s17 + $0x98] sm:$0xff] %vm668_vm3, %v636_v17 }
  0xcc   : > { %v648_v42 = vpop.f32.mrf.mxu3 }
  0xcd   : > { %673 = vst.msk [vmem:[%s1179_s17 + $0x20] sm:$0xff] %vm668_vm3, %v599_v18 }
  0xce   : > { %v605_v19 = vpop.f32.mrf.mxu1  ;;  %v549_v20 = vpop.f32.mrf.mxu2 }
  0xcf   : > { %v550_v22 = vadd.f32 %v1171_v51, %v549_v20 }
  0xd0   : > { %v511_v23 = vpop.f32.mrf.mxu0 }
  0xd1   : > { %v512_v24 = vadd.f32 %v1171_v51, %v511_v23  ;;  %v639_v25 = vadd.f32 %v638_v3, %v550_v22 }
  0xd3   : > { %v601_v26 = vadd.f32 %v600_v4, %v512_v24  ;;  %689 = vst.msk [vmem:[%s1179_s17 + $0xa0] sm:$0xff] %vm668_vm3, %v639_v25 }
  0xd4   : > { %v650_v52 = vpop.f32.mrf.mxu3 }
  0xd5   : > { %674 = vst.msk [vmem:[%s1179_s17 + $0x28] sm:$0xff] %vm668_vm3, %v601_v26 }
  0xd6   : > { %v608_v27 = vpop.f32.mrf.mxu1  ;;  %v551_v28 = vpop.f32.mrf.mxu2 }
  0xd7   : > { %v552_v29 = vadd.f32 %v1171_v51, %v551_v28  ;;  %v540_v28 = vadd.f32 %v1171_v51, %v1183_v57 }
  0xd8   : > { %v514_v30 = vpop.f32.mrf.mxu0 }
  0xd9   : > { %v515_v31 = vadd.f32 %v1171_v51, %v514_v30  ;;  %v641_v33 = vadd.f32 %v640_v12, %v552_v29 }
  0xdb   : > { %v604_v34 = vadd.f32 %v603_v11, %v515_v31  ;;  %690 = vst.msk [vmem:[%s1179_s17 + $0xa8] sm:$0xff] %vm668_vm3, %v641_v33 }
  0xdc   : > { %v653_v62 = vpop.f32.mrf.mxu3 }
  0xdd   : > { %675 = vst.msk [vmem:[%s1179_s17 + $0x30] sm:$0xff] %vm668_vm3, %v604_v34 }
  0xde   : > { %v610_v35 = vpop.f32.mrf.mxu1  ;;  %v554_v36 = vpop.f32.mrf.mxu2 }
  0xdf   : > { %v555_v37 = vadd.f32 %v1171_v51, %v554_v36 }
  0xe0   : > { %v516_v38 = vpop.f32.mrf.mxu0 }
  0xe1   : > { %v517_v39 = vadd.f32 %v1171_v51, %v516_v38  ;;  %v644_v40 = vadd.f32 %v643_v21, %v555_v37  ;;  %v542_v37 = vadd.f32 %v1171_v51, %v1188_v63 }
  0xe3   : > { %v606_v41 = vadd.f32 %v605_v19, %v517_v39  ;;  %691 = vst.msk [vmem:[%s1179_s17 + $0xb0] sm:$0xff] %vm668_vm3, %v644_v40 }
  0xe4   : > { %v655_v10 = vpop.f32.mrf.mxu3 }
  0xe5   : > { %676 = vst.msk [vmem:[%s1179_s17 + $0x38] sm:$0xff] %vm668_vm3, %v606_v41 }
  0xe6   : > { %v613_v43 = vpop.f32.mrf.mxu1  ;;  %v556_v44 = vpop.f32.mrf.mxu2 }
  0xe7   : > { %v557_v45 = vadd.f32 %v1171_v51, %v556_v44 }
  0xe8   : > { %v519_v46 = vpop.f32.mrf.mxu0 }
  0xe9   : > { %v520_v47 = vadd.f32 %v1171_v51, %v519_v46  ;;  %v646_v48 = vadd.f32 %v645_v32, %v557_v45 }
  0xeb   : > { %v609_v49 = vadd.f32 %v608_v27, %v520_v47  ;;  %692 = vst.msk [vmem:[%s1179_s17 + $0xb8] sm:$0xff] %vm668_vm3, %v646_v48 }
  0xec   : > { %v658_v20 = vpop.f32.mrf.mxu3 }
  0xed   : > { %677 = vst.msk [vmem:[%s1179_s17 + $0x40] sm:$0xff] %vm668_vm3, %v609_v49 }
  0xee   : > { %v615_v50 = vpop.f32.mrf.mxu1  ;;  %v559_v53 = vpop.f32.mrf.mxu2 }
  0xef   : > { %v560_v54 = vadd.f32 %v1171_v51, %v559_v53 }
  0xf0   : > { %v521_v55 = vpop.f32.mrf.mxu0 }
  0xf1   : > { %v522_v56 = vadd.f32 %v1171_v51, %v521_v55  ;;  %v649_v58 = vadd.f32 %v648_v42, %v560_v54 }
  0xf3   : > { %v611_v59 = vadd.f32 %v610_v35, %v522_v56  ;;  %693 = vst.msk [vmem:[%s1179_s17 + $0xc0] sm:$0xff] %vm668_vm3, %v649_v58 }
  0xf4   : > { %v660_v29 = vpop.f32.mrf.mxu3 }
  0xf5   : > { %678 = vst.msk [vmem:[%s1179_s17 + $0x48] sm:$0xff] %vm668_vm3, %v611_v59 }
  0xf6   : > { %v618_v60 = vpop.f32.mrf.mxu1  ;;  %v561_v61 = vpop.f32.mrf.mxu2 }
  0xf7   : > { %v562_v0 = vadd.f32 %v1171_v51, %v561_v61 }
  0xf8   : > { %v524_v1 = vpop.f32.mrf.mxu0 }
  0xf9   : > { %v525_v2 = vadd.f32 %v1171_v51, %v524_v1  ;;  %v651_v3 = vadd.f32 %v650_v52, %v562_v0 }
  0xfb   : > { %v614_v4 = vadd.f32 %v613_v43, %v525_v2  ;;  %694 = vst.msk [vmem:[%s1179_s17 + $0xc8] sm:$0xff] %vm668_vm3, %v651_v3 }
  0xfc   : > { %v663_v40 = vpop.f32.mrf.mxu3 }
  0xfd   : > { %679 = vst.msk [vmem:[%s1179_s17 + $0x50] sm:$0xff] %vm668_vm3, %v614_v4 }
  0xfe   : > { %v620_v5 = vpop.f32.mrf.mxu1  ;;  %v564_v6 = vpop.f32.mrf.mxu2 }
  0xff   : > { %v565_v7 = vadd.f32 %v1171_v51, %v564_v6 }
 0x100   : > { %v526_v8 = vpop.f32.mrf.mxu0 }
 0x101   : > { %v527_v9 = vadd.f32 %v1171_v51, %v526_v8  ;;  %v654_v11 = vadd.f32 %v653_v62, %v565_v7 }
 0x103   : > { %v616_v12 = vadd.f32 %v615_v50, %v527_v9  ;;  %695 = vst.msk [vmem:[%s1179_s17 + $0xd0] sm:$0xff] %vm668_vm3, %v654_v11 }
 0x104   : > { %v665_v48 = vpop.f32.mrf.mxu3 }
 0x105   : > { %680 = vst.msk [vmem:[%s1179_s17 + $0x58] sm:$0xff] %vm668_vm3, %v616_v12 }
 0x106   : > { %v623_v13 = vpop.f32.mrf.mxu1  ;;  %v566_v14 = vpop.f32.mrf.mxu2 }
 0x107   : > { %v567_v15 = vadd.f32 %v1171_v51, %v566_v14 }
 0x108   : > { %v529_v16 = vpop.f32.mrf.mxu0 }
 0x109   : > { %v530_v17 = vadd.f32 %v1171_v51, %v529_v16  ;;  %v656_v18 = vadd.f32 %v655_v10, %v567_v15 }
 0x10b   : > { %v619_v19 = vadd.f32 %v618_v60, %v530_v17  ;;  %696 = vst.msk [vmem:[%s1179_s17 + $0xd8] sm:$0xff] %vm668_vm3, %v656_v18 }
 0x10d   : > { %681 = vst.msk [vmem:[%s1179_s17 + $0x60] sm:$0xff] %vm668_vm3, %v619_v19 }
 0x10e   : > { %v625_v21 = vpop.f32.mrf.mxu1  ;;  %v569_v22 = vpop.f32.mrf.mxu2 }
 0x10f   : > { %v570_v23 = vadd.f32 %v1171_v51, %v569_v22 }
 0x110   : > { %v531_v24 = vpop.f32.mrf.mxu0 }
 0x111   : > { %v532_v25 = vadd.f32 %v1171_v51, %v531_v24  ;;  %v659_v26 = vadd.f32 %v658_v20, %v570_v23 }
 0x113   : > { %v621_v27 = vadd.f32 %v620_v5, %v532_v25  ;;  %697 = vst.msk [vmem:[%s1179_s17 + $0xe0] sm:$0xff] %vm668_vm3, %v659_v26 }
 0x115   : > { %682 = vst.msk [vmem:[%s1179_s17 + $0x68] sm:$0xff] %vm668_vm3, %v621_v27 }
 0x116   : > { %v628_v30 = vpop.f32.mrf.mxu1  ;;  %v571_v32 = vpop.f32.mrf.mxu2 }
 0x117   : > { %v629_v31 = vadd.f32 %v628_v30, %v540_v28  ;;  %v572_v33 = vadd.f32 %v1171_v51, %v571_v32 }
 0x118   : > { %v534_v34 = vpop.f32.mrf.mxu0 }
 0x119   : > { %685 = vst.msk [vmem:[%s1179_s17 + $0x80] sm:$0xff] %vm668_vm3, %v629_v31  ;;  %v535_v35 = vadd.f32 %v1171_v51, %v534_v34  ;;  %v661_v36 = vadd.f32 %v660_v29, %v572_v33 }
 0x11b   : > { %v624_v57 = vadd.f32 %v623_v13, %v535_v35  ;;  %698 = vst.msk [vmem:[%s1179_s17 + $0xe8] sm:$0xff] %vm668_vm3, %v661_v36 }
 0x11d   : > { %683 = vst.msk [vmem:[%s1179_s17 + $0x70] sm:$0xff] %vm668_vm3, %v624_v57 }
 0x11e   : > { %v630_v38 = vpop.f32.mrf.mxu1  ;;  %v574_v41 = vpop.f32.mrf.mxu2 }
 0x11f   : > { %v631_v39 = vadd.f32 %v630_v38, %v542_v37  ;;  %v575_v42 = vadd.f32 %v1171_v51, %v574_v41 }
 0x120   : > { %v536_v43 = vpop.f32.mrf.mxu0 }
 0x121   : > { %686 = vst.msk [vmem:[%s1179_s17 + $0x88] sm:$0xff] %vm668_vm3, %v631_v39  ;;  %v537_v44 = vadd.f32 %v1171_v51, %v536_v43  ;;  %v664_v45 = vadd.f32 %v663_v40, %v575_v42 }
 0x123   : > { %v626_v46 = vadd.f32 %v625_v21, %v537_v44  ;;  %699 = vst.msk [vmem:[%s1179_s17 + $0xf0] sm:$0xff] %vm668_vm3, %v664_v45 }
 0x125   : > { %684 = vst.msk [vmem:[%s1179_s17 + $0x78] sm:$0xff] %vm668_vm3, %v626_v46 }
 0x126   : > { %v576_v63 = vpop.f32.mrf.mxu2 }
 0x127   : > { %v577_v47 = vadd.f32 %v1171_v51, %v576_v63 }
 0x129   : > { %v666_v49 = vadd.f32 %v665_v48, %v577_v47 }
 0x12b   : > { %700 = vst.msk [vmem:[%s1179_s17 + $0xf8] sm:$0xff] %vm668_vm3, %v666_v49 }
 0x12c PF: > { %s13_s12 = sadd.s32 1, %s1017_s12  }
 0x12d   : > { %p10_p4 = scmp.ge.s32.totalorder %s13_s12, 4  }
 0x12f   :  { %12 = sbr.rel (!%p10_p4) target bundleno = 1 (0x1), region = 62 }

</bundles_post_ra>
